<compile_context>
chip_gen: v5e
topology: v5e:2x2
jax: 0.10.0
libtpu: 0.0.40
codegen_flags: <defaults>
</compile_context>

<pallas_src>
import jax
import jax.numpy as jnp
from jax.experimental import pallas as pl
from jax.experimental.pallas import tpu as pltpu

IN_DIM = 2048
HID_DIM = 128
OUT_DIM = 11
OUT_PAD = 128                     # lane-padded logits width inside the kernel
MAX_BATCH_TILE = 1024             # biggest batch tile (bt=1024 -> ~17.6 MiB VMEM)
VMEM_LIMIT_BYTES = 28 * 1024 * 1024


def _round_up(x, m):
    return ((x + m - 1) // m) * m


def _cdiv(a, b):
    return -(-a // b)


def _num_tensorcores_per_chip():
    """Heuristic TC count for grid shaping (only affects tiling, not results)."""
    try:
        kind = jax.devices()[0].device_kind.lower()
    except Exception:
        return 1
    if "lite" in kind or "v5e" in kind or "v6e" in kind or "v6" in kind:
        return 1
    if any(tag in kind for tag in ("v7", "v4", "v3", "v5p")):
        return 2
    return 1


def _pick_batch_tile(B):
    """Sublane(8)-aligned batch tile; on 2-TC chips keep an even step count."""
    n_cores = _num_tensorcores_per_chip()
    b8 = _round_up(max(B, 1), 8)
    if n_cores == 1 and b8 <= MAX_BATCH_TILE:
        return b8                                   # single big tile, 1 grid step
    steps = max(n_cores, _cdiv(b8, MAX_BATCH_TILE))
    steps = _round_up(steps, n_cores)               # even load across TensorCores
    return _round_up(_cdiv(b8, steps), 8)           # <= MAX_BATCH_TILE by construction


def _mlp_kernel(x_ref, w1_ref, b1_ref, w2_ref, b2_ref, o_ref):
    # x_ref : (BT, IN_DIM)   f32
    # w1_ref: (IN_DIM, HID_DIM) bf16,  b1_ref: (1, HID_DIM)  f32
    # w2_ref: (HID_DIM, OUT_PAD) bf16, b2_ref: (1, OUT_PAD)  f32
    # o_ref : (BT, OUT_PAD)  f32
    x = x_ref[...].astype(w1_ref.dtype)            # in-kernel cast only (no HBM cost)
    h = jnp.dot(x, w1_ref[...], preferred_element_type=jnp.float32)
    h = jnp.maximum(h + b1_ref[...], 0.0)          # f32 bias + ReLU
    y = jnp.dot(h.astype(w2_ref.dtype), w2_ref[...],
                preferred_element_type=jnp.float32)
    o_ref[...] = (y + b2_ref[...]).astype(o_ref.dtype)


def prepare_params(params, weights_dtype=jnp.bfloat16):
    """One-time kernel-layout prep (hoisted out of the per-call path).

    Casts weights to `weights_dtype` (bf16 by default -> halves weight DMA),
    pads the 11-wide classifier to 128 lanes, reshapes biases to (1, N) f32."""
    w1 = params["w1"].astype(weights_dtype)
    b1 = params["b1"].reshape(1, HID_DIM).astype(jnp.float32)
    w2 = jnp.zeros((HID_DIM, OUT_PAD), params["w2"].dtype)
    w2 = w2.at[:, :OUT_DIM].set(params["w2"]).astype(weights_dtype)
    b2 = jnp.zeros((1, OUT_PAD), jnp.float32)
    b2 = b2.at[0, :OUT_DIM].set(params["b2"].astype(jnp.float32))
    return {"w1": w1, "b1": b1, "w2": w2, "b2": b2}


def action_net_cnn_stream_forward(i3d_fmap, kparams):
    """Pallas forward.  i3d_fmap: f32[B, 2048], kparams from prepare_params().

    Returns {"action_index_logit": f32[B, 11]}."""
    B = i3d_fmap.shape[0]
    bt = _pick_batch_tile(B)
    grid = (pl.cdiv(B, bt),)

    w_bytes = kparams["w1"].dtype.itemsize
    cost = pl.CostEstimate(
        flops=2 * B * (IN_DIM * HID_DIM + HID_DIM * OUT_PAD),
        transcendentals=0,
        bytes_accessed=(4 * B * IN_DIM                                  # x
                        + w_bytes * (IN_DIM * HID_DIM + HID_DIM * OUT_PAD)  # weights
                        + 4 * B * OUT_PAD                               # out
                        + 4 * (HID_DIM + OUT_PAD)),                     # biases
    )

    out = pl.pallas_call(
        _mlp_kernel,
        out_shape=jax.ShapeDtypeStruct((B, OUT_PAD), jnp.float32),
        grid_spec=pltpu.PrefetchScalarGridSpec(
            num_scalar_prefetch=0,
            grid=grid,
            in_specs=[
                pl.BlockSpec((bt, IN_DIM), lambda i: (i, 0)),
                # grid-invariant weight/bias blocks: block index never changes,
                # so they are DMA'd exactly once per call.
                pl.BlockSpec((IN_DIM, HID_DIM), lambda i: (0, 0)),
                pl.BlockSpec((1, HID_DIM), lambda i: (0, 0)),
                pl.BlockSpec((HID_DIM, OUT_PAD), lambda i: (0, 0)),
                pl.BlockSpec((1, OUT_PAD), lambda i: (0, 0)),
            ],
            out_specs=pl.BlockSpec((bt, OUT_PAD), lambda i: (i, 0)),
        ),
        compiler_params=pltpu.CompilerParams(
            dimension_semantics=("parallel",),      # megacore-shards the batch grid
            vmem_limit_bytes=VMEM_LIMIT_BYTES),     # allow the 1024-row tile on v5e
        cost_estimate=cost,
    )(i3d_fmap, kparams["w1"], kparams["b1"], kparams["w2"], kparams["b2"])

    # Rows beyond B were never written (masked partial block); lanes beyond 11
    # are zero-weight padding.  The lane slice is kept for module semantics
    # (consumers that accept the padded (B,128) block should fuse it instead).
    return {"action_index_logit": out[:, :OUT_DIM]}


def init_params(key):
    """Deterministic init mirroring nn.Linear defaults (U[-1/sqrt(fan_in), +])."""
    k1, k2, k3, k4 = jax.random.split(key, 4)
    bound1 = 1.0 / jnp.sqrt(float(IN_DIM))
    bound2 = 1.0 / jnp.sqrt(float(HID_DIM))
    # stored pre-transposed: y = x @ W + b
    w1 = jax.random.uniform(k1, (IN_DIM, HID_DIM), jnp.float32, -bound1, bound1)
    b1 = jax.random.uniform(k2, (HID_DIM,), jnp.float32, -bound1, bound1)
    w2 = jax.random.uniform(k3, (HID_DIM, OUT_DIM), jnp.float32, -bound2, bound2)
    b2 = jax.random.uniform(k4, (OUT_DIM,), jnp.float32, -bound2, bound2)
    return {"w1": w1, "b1": b1, "w2": w2, "b2": b2}


def reference_forward(i3d_fmap, params):
    """Original f32 module semantics."""
    h = jnp.maximum(i3d_fmap @ params["w1"] + params["b1"], 0.0)
    return h @ params["w2"] + params["b2"]


def reference_forward_prepared(i3d_fmap, kparams):
    """Reference that matches the kernel math exactly (bf16 operands, f32 acc)."""
    x = i3d_fmap.astype(kparams["w1"].dtype)
    h = jnp.dot(x, kparams["w1"], preferred_element_type=jnp.float32) + kparams["b1"]
    h = jnp.maximum(h, 0.0)
    y = jnp.dot(h.astype(kparams["w2"].dtype), kparams["w2"],
                preferred_element_type=jnp.float32) + kparams["b2"]
    return y[:, :OUT_DIM]


if __name__ == "__main__":
    key = jax.random.PRNGKey(0)
    pkey, xkey1, xkey2 = jax.random.split(key, 3)
    params = init_params(pkey)
    kparams = prepare_params(params)   # one-time prep: bf16 weights, padded classifier

    # --- small-batch path (batch=2, the module's real serving shape) ---
    batch = 2
    i3d_fmap = jax.random.normal(xkey1, (batch, IN_DIM), jnp.float32)
    pred = action_net_cnn_stream_forward(i3d_fmap, kparams)
    logits = jax.block_until_ready(pred["action_index_logit"])
    assert logits.shape == (batch, OUT_DIM)
    # exact-math check (same bf16 operands / f32 accumulation as the kernel)
    ref_q = reference_forward_prepared(i3d_fmap, kparams)
    assert jnp.allclose(logits, ref_q, atol=1e-3, rtol=1e-3)
    # sanity check vs. the original f32 module (bf16 weight-quantization noise only)
    ref_f32 = reference_forward(i3d_fmap, params)
    assert jnp.allclose(logits, ref_f32, atol=3e-2, rtol=3e-2)

    # --- large-batch path: multi-step grid, core-aware tiling, masked partial
    #     last block (2500 rows is never an exact multiple of the chosen tile) ---
    big_batch = 2500
    x_big = jax.random.normal(xkey2, (big_batch, IN_DIM), jnp.float32)
    pred_big = action_net_cnn_stream_forward(x_big, kparams)
    logits_big = jax.block_until_ready(pred_big["action_index_logit"])
    assert logits_big.shape == (big_batch, OUT_DIM)
    ref_q_big = reference_forward_prepared(x_big, kparams)
    assert jnp.allclose(logits_big, ref_q_big, atol=1e-3, rtol=1e-3)
    ref_f32_big = reference_forward(x_big, params)
    assert jnp.allclose(logits_big, ref_f32_big, atol=3e-2, rtol=3e-2)

    print("KERNEL_OK")
</pallas_src>

<mosaic_0001>
module attributes {stable_mosaic.version = 11 : i64} {
  func.func @_mlp_kernel(%arg0: i32, %arg1: memref<8x2048xf32, #tpu.memory_space<vmem>>, %arg2: memref<2048x128xbf16, #tpu.memory_space<vmem>>, %arg3: memref<1x128xf32, #tpu.memory_space<vmem>>, %arg4: memref<128x128xbf16, #tpu.memory_space<vmem>>, %arg5: memref<1x128xf32, #tpu.memory_space<vmem>>, %arg6: memref<8x128xf32, #tpu.memory_space<vmem>>) attributes {dimension_semantics = [#tpu.dimension_semantics<parallel>], iteration_bounds = array<i64: 1>, scalar_prefetch = 0 : i64, scratch_operands = 0 : i64, tpu.core_type = #tpu.core_type<tc>, window_params = [{transform_indices = @transform_0, window_bounds = array<i64: 8, 2048>}, {pipeline_mode = #tpu.pipeline_mode<synchronous>, transform_indices = @transform_1, window_bounds = array<i64: 2048, 128>}, {pipeline_mode = #tpu.pipeline_mode<synchronous>, transform_indices = @transform_2, window_bounds = array<i64: 1, 128>}, {pipeline_mode = #tpu.pipeline_mode<synchronous>, transform_indices = @transform_3, window_bounds = array<i64: 128, 128>}, {pipeline_mode = #tpu.pipeline_mode<synchronous>, transform_indices = @transform_4, window_bounds = array<i64: 1, 128>}, {transform_indices = @transform_5, window_bounds = array<i64: 8, 128>}]} {
    %c0 = arith.constant 0 : index
    %c0_0 = arith.constant 0 : index
    %0 = vector.load %arg1[%c0, %c0_0] : memref<8x2048xf32, #tpu.memory_space<vmem>>, vector<8x2048xf32>
    %1 = arith.truncf %0 : vector<8x2048xf32> to vector<8x2048xbf16>
    %c0_1 = arith.constant 0 : index
    %c0_2 = arith.constant 0 : index
    %2 = vector.load %arg2[%c0_1, %c0_2] : memref<2048x128xbf16, #tpu.memory_space<vmem>>, vector<2048x128xbf16>
    %cst = arith.constant dense<0.000000e+00> : vector<8x128xf32>
    %3 = tpu.matmul %1, %2, %cst {dimension_numbers = #tpu.dot_dimension_numbers<[1], [0], [0], [1], [0, 0, 1, 1], [], []>} : vector<8x2048xbf16>, vector<2048x128xbf16>, vector<8x128xf32> -> vector<8x128xf32>
    %c0_3 = arith.constant 0 : index
    %c0_4 = arith.constant 0 : index
    %4 = vector.load %arg3[%c0_3, %c0_4] : memref<1x128xf32, #tpu.memory_space<vmem>>, vector<1x128xf32>
    %5 = vector.broadcast %4 : vector<1x128xf32> to vector<8x128xf32>
    %6 = arith.addf %3, %5 : vector<8x128xf32>
    %cst_5 = arith.constant 0.000000e+00 : f32
    %7 = vector.broadcast %cst_5 : f32 to vector<8x128xf32>
    %8 = arith.maximumf %6, %7 : vector<8x128xf32>
    %9 = arith.truncf %8 : vector<8x128xf32> to vector<8x128xbf16>
    %c0_6 = arith.constant 0 : index
    %c0_7 = arith.constant 0 : index
    %10 = vector.load %arg4[%c0_6, %c0_7] : memref<128x128xbf16, #tpu.memory_space<vmem>>, vector<128x128xbf16>
    %cst_8 = arith.constant dense<0.000000e+00> : vector<8x128xf32>
    %11 = tpu.matmul %9, %10, %cst_8 {dimension_numbers = #tpu.dot_dimension_numbers<[1], [0], [0], [1], [0, 0, 1, 1], [], []>} : vector<8x128xbf16>, vector<128x128xbf16>, vector<8x128xf32> -> vector<8x128xf32>
    %c0_9 = arith.constant 0 : index
    %c0_10 = arith.constant 0 : index
    %12 = vector.load %arg5[%c0_9, %c0_10] : memref<1x128xf32, #tpu.memory_space<vmem>>, vector<1x128xf32>
    %13 = vector.broadcast %12 : vector<1x128xf32> to vector<8x128xf32>
    %14 = arith.addf %11, %13 : vector<8x128xf32>
    %c0_11 = arith.constant 0 : index
    %c0_12 = arith.constant 0 : index
    %15 = vector.load %arg6[%c0_11, %c0_12] : memref<8x128xf32, #tpu.memory_space<vmem>>, vector<8x128xf32>
    tpu.vector_store %arg6[%c0_11, %c0_12], %14 {strides = array<i32>} : memref<8x128xf32, #tpu.memory_space<vmem>>, vector<8x128xf32>,
    return
  }
  func.func @transform_0(%arg0: i32) -> (i32, i32) {
    %c0_i32 = arith.constant 0 : i32
    %c0_i32_0 = arith.constant 0 : i32
    return %arg0, %c0_i32 : i32, i32
  }
  func.func @transform_1(%arg0: i32) -> (i32, i32) {
    %c0_i32 = arith.constant 0 : i32
    %c0_i32_0 = arith.constant 0 : i32
    %c0_i32_1 = arith.constant 0 : i32
    return %c0_i32, %c0_i32_0 : i32, i32
  }
  func.func @transform_2(%arg0: i32) -> (i32, i32) {
    %c0_i32 = arith.constant 0 : i32
    %c0_i32_0 = arith.constant 0 : i32
    %c0_i32_1 = arith.constant 0 : i32
    return %c0_i32, %c0_i32_0 : i32, i32
  }
  func.func @transform_3(%arg0: i32) -> (i32, i32) {
    %c0_i32 = arith.constant 0 : i32
    %c0_i32_0 = arith.constant 0 : i32
    %c0_i32_1 = arith.constant 0 : i32
    return %c0_i32, %c0_i32_0 : i32, i32
  }
  func.func @transform_4(%arg0: i32) -> (i32, i32) {
    %c0_i32 = arith.constant 0 : i32
    %c0_i32_0 = arith.constant 0 : i32
    %c0_i32_1 = arith.constant 0 : i32
    return %c0_i32, %c0_i32_0 : i32, i32
  }
  func.func @transform_5(%arg0: i32) -> (i32, i32) {
    %c0_i32 = arith.constant 0 : i32
    %c0_i32_0 = arith.constant 0 : i32
    return %arg0, %c0_i32 : i32, i32
  }
}

</mosaic_0001>

<bundles_post_ra>
// kernel: tpu_custom_call.1
= control target key start
LH: loop header
LB: loop body
LE: loop exit
PB: predicated region body
PF: predicated region fallthrough
CT: control target
= control target key end

     0   :  { %10 = vsyncpa [#allocation3], 0  ;;  %s2364_s0 = inlined_call_operand.hbm [shape: f32[2,2048], index: 0, kind: input, shape index: {}]   ;;  %s2365_s1 = inlined_call_operand.hbm [shape: bf16[2048,128], index: 1, kind: input, shape index: {}]   ;;  %s2366_s2 = inlined_call_operand.vmem [shape: f32[1,128], index: 2, kind: input, shape index: {}]   ;;  %s2367_s3 = inlined_call_operand.hbm [shape: bf16[128,128], index: 3, kind: input, shape index: {}]   ;;  %s2368_s4 = inlined_call_operand.vmem [shape: f32[1,128], index: 4, kind: input, shape index: {}]   ;;  %s2369_s5 = inlined_call_operand.hbm [shape: f32[2,128], index: 5, kind: output, shape index: {}]  }
   0x1   :  { %11 = vsyncpa [#allocation6], 0 }
   0x2   :  { %12 = vsyncpa [#allocation4], 0  ;;  %s30_s20 = sshll.u32 %s2365_s1, 4  ;;  %s31_s20 = int_to_ptr.hbm [resolvable:$true] %s30_s20 }
   0x3   :  { %16 = vsyncadd [#allocation3], 1536  ;;  %s2304_s21 = smov [#allocation5]   ;;  %s17_s25 = sshll.u32 %s2364_s0, 4  ;;  %s18_s25 = int_to_ptr.hbm [resolvable:$true] %s17_s25 }
   0x4   :  { %s32_s22 = sshll.u32 %s2304_s21, 4  ;;  %s2305_s26 = smov 64   ;;  %s33_s22 = int_to_ptr.vmem [resolvable:$true] %s32_s22 }
   0x5   :  { %s2306_s27 = smov 4   ;;  %s2307_s28 = smov [#allocation2]  }
   0x6   :  { %38 = dma.hbm_to_vmem [thread:$0]  %s31_s20, 16384, %s33_s22, [#allocation6], %s2305_s26, %s2305_s26, %s2306_s27  }
   0x7   :  { %s19_s29 = sshll.u32 %s2307_s28, 4  ;;  %s2308_s30 = smov 512   ;;  %s20_s29 = int_to_ptr.vmem [resolvable:$true] %s19_s29 }
   0x8   :  { %s2309_s6 = smov 32   ;;  %s45_s8 = sshll.u32 %s2367_s3, 4  ;;  %s46_s8 = int_to_ptr.hbm [resolvable:$true] %s45_s8 }
   0x9   :  { %25 = dma.hbm_to_vmem [thread:$0]  %s18_s25, 512, %s20_s29, [#allocation3], %s2308_s30, %s2308_s30, %s2309_s6  }
   0xa   :  { %s2310_s9 = smov [#allocation7]  }
   0xb   :  { %s47_s10 = sshll.u32 %s2310_s9, 4  ;;  %s48_s10 = int_to_ptr.vmem [resolvable:$true] %s47_s10 }
   0xc   :  { %53 = dma.hbm_to_vmem [thread:$0]  %s46_s8, 1024, %s48_s10, [#allocation6], %s2305_s26, %s2305_s26, %s2306_s27  }
   0xd   :  { %2298 = dma.done.wait [#allocation3], 2048  }
   0xe   :  { %2299 = vsyncadd [#allocation3], 4294965248 }
   0xf   :  { %2300 = dma.done.wait [#allocation6], 17408  }
  0x10   :  { %2301 = vsyncadd [#allocation6], 4294949888  ;;  %v2062_v0 = vld [vmem:[#allocation5 + $0x38] sm:$0xff]  ;;  %v2061_v4 = vld [vmem:[#allocation5 + $0x30] sm:$0xff] }
  0x11   :  { %v2070_v1 = vld [vmem:[#allocation5 + $0x78] sm:$0xff]  ;;  %1199 = vmatpush.bf16.msra.mxu0 %v2062_v0  ;;  %v2069_v5 = vld [vmem:[#allocation5 + $0x70] sm:$0xff]  ;;  %v2060_v8 = vld [vmem:[#allocation5 + $0x28] sm:$0xff] }
  0x12   :  { %v2078_v2 = vld [vmem:[#allocation5 + $0xb8] sm:$0xff]  ;;  %1212 = vmatpush.bf16.msra.mxu1 %v2070_v1  ;;  %v2077_v6 = vld [vmem:[#allocation5 + $0xb0] sm:$0xff]  ;;  %v2068_v9 = vld [vmem:[#allocation5 + $0x68] sm:$0xff] }
  0x13   :  { %v2086_v3 = vld [vmem:[#allocation5 + $0xf8] sm:$0xff]  ;;  %1225 = vmatpush.bf16.msra.mxu2 %v2078_v2  ;;  %v2085_v7 = vld [vmem:[#allocation5 + $0xf0] sm:$0xff]  ;;  %v2076_v10 = vld [vmem:[#allocation5 + $0xa8] sm:$0xff] }
  0x14   :  { %1238 = vmatpush.bf16.msra.mxu3 %v2086_v3  ;;  %v2084_v11 = vld [vmem:[#allocation5 + $0xe8] sm:$0xff]  ;;  %v2059_v12 = vld [vmem:[#allocation5 + $0x20] sm:$0xff]  ;;  %v2058_v16 = vld [vmem:[#allocation5 + $0x18] sm:$0xff] }
  0x15   :  { %1200 = vmatpush.bf16.msra.mxu0 %v2061_v4  ;;  %v2067_v13 = vld [vmem:[#allocation5 + $0x60] sm:$0xff]  ;;  %v2066_v17 = vld [vmem:[#allocation5 + $0x58] sm:$0xff]  ;;  %v2057_v20 = vld [vmem:[#allocation5 + $0x10] sm:$0xff] }
  0x16   :  { %1213 = vmatpush.bf16.msra.mxu1 %v2069_v5  ;;  %v2075_v14 = vld [vmem:[#allocation5 + $0xa0] sm:$0xff]  ;;  %v2074_v18 = vld [vmem:[#allocation5 + $0x98] sm:$0xff]  ;;  %v2065_v21 = vld [vmem:[#allocation5 + $0x50] sm:$0xff] }
  0x17   :  { %1226 = vmatpush.bf16.msra.mxu2 %v2077_v6  ;;  %v2083_v15 = vld [vmem:[#allocation5 + $0xe0] sm:$0xff]  ;;  %v2082_v19 = vld [vmem:[#allocation5 + $0xd8] sm:$0xff]  ;;  %v2073_v26 = vld [vmem:[#allocation5 + $0x90] sm:$0xff] }
  0x18   :  { %1239 = vmatpush.bf16.msra.mxu3 %v2085_v7  ;;  %v68_v22 = vld [vmem:[#allocation2] sm:$0xff]  ;;  %v2081_v27 = vld [vmem:[#allocation5 + $0xd0] sm:$0xff]  ;;  %v2056_v28 = vld [vmem:[#allocation5 + $0x8] sm:$0xff] }
  0x19   :  { %1201 = vmatpush.bf16.msra.mxu0 %v2060_v8  ;;  %v72_v23 = vld [vmem:[#allocation2 + $0x20] sm:$0xff]  ;;  %100 = vst [vmem:[#allocation1] ss:$4 sm:$0xff] %v68_v22  ;;  %v2064_v29 = vld [vmem:[#allocation5 + $0x48] sm:$0xff]  ;;  %v2094_v36 = vld [vmem:[#allocation5 + $0x138] sm:$0xff] }
  0x1a   :  { %1214 = vmatpush.bf16.msra.mxu1 %v2068_v9  ;;  %v76_v24 = vld [vmem:[#allocation2 + $0x40] sm:$0xff]  ;;  %102 = vst [vmem:[#allocation1 + $0x1] ss:$4 sm:$0xff] %v72_v23  ;;  %v2072_v30 = vld [vmem:[#allocation5 + $0x88] sm:$0xff]  ;;  %v2102_v37 = vld [vmem:[#allocation5 + $0x178] sm:$0xff] }
  0x1b   :  { %1227 = vmatpush.bf16.msra.mxu2 %v2076_v10  ;;  %v80_v25 = vld [vmem:[#allocation2 + $0x60] sm:$0xff]  ;;  %104 = vst [vmem:[#allocation1 + $0x2] ss:$4 sm:$0xff] %v76_v24  ;;  %v2080_v31 = vld [vmem:[#allocation5 + $0xc8] sm:$0xff]  ;;  %v2110_v38 = vld [vmem:[#allocation5 + $0x1b8] sm:$0xff] }
  0x1c   :  { %1240 = vmatpush.bf16.msra.mxu3 %v2084_v11  ;;  %106 = vst [vmem:[#allocation1 + $0x3] ss:$4 sm:$0xff] %v80_v25  ;;  %v2055_v32 = vld [vmem:[#allocation5] sm:$0xff]  ;;  %v2118_v39 = vld [vmem:[#allocation5 + $0x1f8] sm:$0xff]  ;;  %v70_v40 = vld [vmem:[#allocation2 + $0x10] sm:$0xff] }
  0x1d   :  { %1202 = vmatpush.bf16.msra.mxu0 %v2059_v12  ;;  %v2063_v33 = vld [vmem:[#allocation5 + $0x40] sm:$0xff]  ;;  %v74_v41 = vld [vmem:[#allocation2 + $0x30] sm:$0xff]  ;;  %v69_v52 = vld [vmem:[#allocation2 + $0x8] sm:$0xff] }
  0x1e   :  { %1215 = vmatpush.bf16.msra.mxu1 %v2067_v13  ;;  %v2071_v34 = vld [vmem:[#allocation5 + $0x80] sm:$0xff]  ;;  %v78_v42 = vld [vmem:[#allocation2 + $0x50] sm:$0xff]  ;;  %v73_v55 = vld [vmem:[#allocation2 + $0x28] sm:$0xff]  ;;  %108 = vst [vmem:[#allocation1 + $0x20] ss:$4 sm:$0xff] %v69_v52 }
  0x1f   :  { %1228 = vmatpush.bf16.msra.mxu2 %v2075_v14  ;;  %v2079_v35 = vld [vmem:[#allocation5 + $0xc0] sm:$0xff]  ;;  %v82_v49 = vld [vmem:[#allocation2 + $0x70] sm:$0xff]  ;;  %v77_v58 = vld [vmem:[#allocation2 + $0x48] sm:$0xff]  ;;  %110 = vst [vmem:[#allocation1 + $0x21] ss:$4 sm:$0xff] %v73_v55 }
  0x20   :  { %1241 = vmatpush.bf16.msra.mxu3 %v2083_v15  ;;  %v2093_v53 = vld [vmem:[#allocation5 + $0x130] sm:$0xff]  ;;  %v81_v59 = vld [vmem:[#allocation2 + $0x68] sm:$0xff]  ;;  %112 = vst [vmem:[#allocation1 + $0x22] ss:$4 sm:$0xff] %v77_v58  ;;  %v2091_v0 = vld [vmem:[#allocation5 + $0x120] sm:$0xff] }
  0x21   :  { %1203 = vmatpush.bf16.msra.mxu0 %v2058_v16  ;;  %v2101_v54 = vld [vmem:[#allocation5 + $0x170] sm:$0xff]  ;;  %v2092_v60 = vld [vmem:[#allocation5 + $0x128] sm:$0xff]  ;;  %114 = vst [vmem:[#allocation1 + $0x23] ss:$4 sm:$0xff] %v81_v59  ;;  %v2099_v1 = vld [vmem:[#allocation5 + $0x160] sm:$0xff] }
  0x22   :  { %1216 = vmatpush.bf16.msra.mxu1 %v2066_v17  ;;  %v2109_v56 = vld [vmem:[#allocation5 + $0x1b0] sm:$0xff]  ;;  %v2100_v61 = vld [vmem:[#allocation5 + $0x168] sm:$0xff]  ;;  %v2107_v2 = vld [vmem:[#allocation5 + $0x1a0] sm:$0xff] }
  0x23   :  { %1229 = vmatpush.bf16.msra.mxu2 %v2074_v18  ;;  %v117_v43 = vld.sshfl [vmem:[#allocation1 + $0x10] sm:$0xff pattern:$0x73625140]  ;;  %v115_v44 = vld.sshfl [vmem:[#allocation1] sm:$0xff pattern:$0x73625140] }
  0x24   :  { %1242 = vmatpush.bf16.msra.mxu3 %v2082_v19  ;;  %v118_v45 = vld.sshfl [vmem:[#allocation1 + $0x18] sm:$0xff pattern:$0x73625140]  ;;  %v116_v46 = vld.sshfl [vmem:[#allocation1 + $0x8] sm:$0xff pattern:$0x73625140]  ;;  %v157_v47 = vpack.c.bf16 %v117_v43, %v117_v43  ;;  %v155_v48 = vpack.c.bf16 %v115_v44, %v115_v44 }
  0x25   :  { %1204 = vmatpush.bf16.msra.mxu0 %v2057_v20  ;;  %123 = vst [vmem:[#allocation1] ss:$4 sm:$0xff] %v70_v40  ;;  %v158_v50 = vpack.c.bf16 %v118_v45, %v118_v45  ;;  %v156_v51 = vpack.c.bf16 %v116_v46, %v116_v46  ;;  %v2117_v57 = vld [vmem:[#allocation5 + $0x1f0] sm:$0xff]  ;;  %v2108_v62 = vld [vmem:[#allocation5 + $0x1a8] sm:$0xff]  ;;  %v2115_v3 = vld [vmem:[#allocation5 + $0x1e0] sm:$0xff] }
  0x26   :  { %1217 = vmatpush.bf16.msra.mxu1 %v2065_v21  ;;  %124 = vst [vmem:[#allocation1 + $0x1] ss:$4 sm:$0xff] %v74_v41  ;;  %v2116_v63 = vld [vmem:[#allocation5 + $0x1e8] sm:$0xff]  ;;  %v2090_v4 = vld [vmem:[#allocation5 + $0x118] sm:$0xff]  ;;  %v2089_v16 = vld [vmem:[#allocation5 + $0x110] sm:$0xff] }
  0x27   :  { %1230 = vmatpush.bf16.msra.mxu2 %v2073_v26  ;;  %125 = vst [vmem:[#allocation1 + $0x2] ss:$4 sm:$0xff] %v78_v42  ;;  %v2098_v5 = vld [vmem:[#allocation5 + $0x158] sm:$0xff]  ;;  %v2097_v17 = vld [vmem:[#allocation5 + $0x150] sm:$0xff]  ;;  %v2088_v20 = vld [vmem:[#allocation5 + $0x108] sm:$0xff] }
  0x28   :  { %1243 = vmatpush.bf16.msra.mxu3 %v2081_v27  ;;  %126 = vst [vmem:[#allocation1 + $0x3] ss:$4 sm:$0xff] %v82_v49  ;;  %v2106_v6 = vld [vmem:[#allocation5 + $0x198] sm:$0xff]  ;;  %v121_v11 = vld.sshfl [vmem:[#allocation1 + $0x30] sm:$0xff pattern:$0x73625140] }
  0x29   :  { %1205 = vmatpush.bf16.msra.mxu0 %v2056_v28  ;;  %v2114_v7 = vld [vmem:[#allocation5 + $0x1d8] sm:$0xff]  ;;  %v122_v13 = vld.sshfl [vmem:[#allocation1 + $0x38] sm:$0xff pattern:$0x73625140]  ;;  %v2096_v21 = vld [vmem:[#allocation5 + $0x148] sm:$0xff] }
  0x2a   :  { %1218 = vmatpush.bf16.msra.mxu1 %v2064_v29  ;;  %v71_v8 = vld [vmem:[#allocation2 + $0x18] sm:$0xff]  ;;  %v120_v14 = vld.sshfl [vmem:[#allocation1 + $0x28] sm:$0xff pattern:$0x73625140]  ;;  %v2105_v18 = vld [vmem:[#allocation5 + $0x190] sm:$0xff] }
  0x2b   :  { %1231 = vmatpush.bf16.msra.mxu2 %v2072_v30  ;;  %v75_v9 = vld [vmem:[#allocation2 + $0x38] sm:$0xff]  ;;  %v2113_v19 = vld [vmem:[#allocation5 + $0x1d0] sm:$0xff]  ;;  %v2104_v22 = vld [vmem:[#allocation5 + $0x188] sm:$0xff] }
  0x2c   :  { %1244 = vmatpush.bf16.msra.mxu3 %v2080_v31  ;;  %v79_v10 = vld [vmem:[#allocation2 + $0x58] sm:$0xff]  ;;  %v2112_v23 = vld [vmem:[#allocation5 + $0x1c8] sm:$0xff]  ;;  %v2087_v24 = vld [vmem:[#allocation5 + $0x100] sm:$0xff] }
  0x2d   :  { %1206 = vmatpush.bf16.msra.mxu0 %v2055_v32  ;;  %v119_v12 = vld.sshfl [vmem:[#allocation1 + $0x20] sm:$0xff pattern:$0x73625140]  ;;  %v2095_v25 = vld [vmem:[#allocation5 + $0x140] sm:$0xff]  ;;  %v161_v32 = vpack.c.bf16 %v121_v11, %v121_v11  ;;  %v2124_v40 = vld [vmem:[#allocation5 + $0x228] sm:$0xff] }
  0x2e   :  { %1219 = vmatpush.bf16.msra.mxu1 %v2063_v33  ;;  %v83_v15 = vld [vmem:[#allocation2 + $0x78] sm:$0xff]  ;;  %127 = vst [vmem:[#allocation1 + $0x20] ss:$4 sm:$0xff] %v71_v8  ;;  %v2103_v26 = vld [vmem:[#allocation5 + $0x180] sm:$0xff]  ;;  %v159_v33 = vpack.c.bf16 %v119_v12, %v119_v12  ;;  %v2132_v41 = vld [vmem:[#allocation5 + $0x268] sm:$0xff] }
  0x2f   :  { %1232 = vmatpush.bf16.msra.mxu2 %v2071_v34  ;;  %128 = vst [vmem:[#allocation1 + $0x21] ss:$4 sm:$0xff] %v75_v9  ;;  %v2111_v27 = vld [vmem:[#allocation5 + $0x1c0] sm:$0xff]  ;;  %v2126_v28 = vld [vmem:[#allocation5 + $0x238] sm:$0xff]  ;;  %v162_v34 = vpack.c.bf16 %v122_v13, %v122_v13  ;;  %v2140_v42 = vld [vmem:[#allocation5 + $0x2a8] sm:$0xff] }
  0x30   :  { %1245 = vmatpush.bf16.msra.mxu3 %v2079_v35  ;;  %1207 = vmatmul.bf16.vlgmr.msra.gmra.mxu0 %v155_v48  ;;  %129 = vst [vmem:[#allocation1 + $0x22] ss:$4 sm:$0xff] %v79_v10  ;;  %v2134_v29 = vld [vmem:[#allocation5 + $0x278] sm:$0xff]  ;;  %v160_v35 = vpack.c.bf16 %v120_v14, %v120_v14  ;;  %v2148_v43 = vld [vmem:[#allocation5 + $0x2e8] sm:$0xff]  ;;  %v2123_v44 = vld [vmem:[#allocation5 + $0x220] sm:$0xff] }
  0x31   :  { %1251 = vmatpush.bf16.msrb.mxu0 %v2094_v36  ;;  %1220 = vmatmul.bf16.vlgmr.msra.gmra.mxu1 %v156_v51  ;;  %130 = vst [vmem:[#allocation1 + $0x23] ss:$4 sm:$0xff] %v83_v15  ;;  %v2142_v30 = vld [vmem:[#allocation5 + $0x2b8] sm:$0xff]  ;;  %v2125_v36 = vld [vmem:[#allocation5 + $0x230] sm:$0xff]  ;;  %v2131_v45 = vld [vmem:[#allocation5 + $0x260] sm:$0xff] }
  0x32   :  { %1264 = vmatpush.bf16.msrb.mxu1 %v2102_v37  ;;  %1233 = vmatmul.bf16.vlgmr.msra.gmra.mxu2 %v157_v47  ;;  %v2150_v31 = vld [vmem:[#allocation5 + $0x2f8] sm:$0xff]  ;;  %v2133_v37 = vld [vmem:[#allocation5 + $0x270] sm:$0xff]  ;;  %v2139_v46 = vld [vmem:[#allocation5 + $0x2a0] sm:$0xff] }
  0x33   :  { %1277 = vmatpush.bf16.msrb.mxu2 %v2110_v38  ;;  %1246 = vmatmul.bf16.vlgmr.msra.gmra.mxu3 %v158_v50  ;;  %v2141_v38 = vld [vmem:[#allocation5 + $0x2b0] sm:$0xff]  ;;  %v2147_v47 = vld [vmem:[#allocation5 + $0x2e0] sm:$0xff]  ;;  %v2122_v48 = vld [vmem:[#allocation5 + $0x218] sm:$0xff] }
  0x34   :  { %1290 = vmatpush.bf16.msrb.mxu3 %v2118_v39  ;;  %v2149_v39 = vld [vmem:[#allocation5 + $0x2f0] sm:$0xff]  ;;  %v2130_v49 = vld [vmem:[#allocation5 + $0x258] sm:$0xff]  ;;  %v2136_v58 = vld [vmem:[#allocation5 + $0x288] sm:$0xff] }
  0x35   :  { %1252 = vmatpush.bf16.msrb.mxu0 %v2093_v53  ;;  %v2138_v50 = vld [vmem:[#allocation5 + $0x298] sm:$0xff]  ;;  %v2121_v52 = vld [vmem:[#allocation5 + $0x210] sm:$0xff]  ;;  %v2144_v59 = vld [vmem:[#allocation5 + $0x2c8] sm:$0xff] }
  0x36   :  { %1265 = vmatpush.bf16.msrb.mxu1 %v2101_v54  ;;  %v2146_v51 = vld [vmem:[#allocation5 + $0x2d8] sm:$0xff]  ;;  %v2129_v53 = vld [vmem:[#allocation5 + $0x250] sm:$0xff] }
  0x37   :  { %1278 = vmatpush.bf16.msrb.mxu2 %v2109_v56  ;;  %v2137_v54 = vld [vmem:[#allocation5 + $0x290] sm:$0xff]  ;;  %v2120_v56 = vld [vmem:[#allocation5 + $0x208] sm:$0xff] }
  0x38   :  { %1291 = vmatpush.bf16.msrb.mxu3 %v2117_v57  ;;  %v2145_v55 = vld [vmem:[#allocation5 + $0x2d0] sm:$0xff]  ;;  %v2128_v57 = vld [vmem:[#allocation5 + $0x248] sm:$0xff] }
  0x39   :  { %1253 = vmatpush.bf16.msrb.mxu0 %v2092_v60  ;;  %v2119_v60 = vld [vmem:[#allocation5 + $0x200] sm:$0xff]  ;;  %v2157_v12 = vld [vmem:[#allocation5 + $0x330] sm:$0xff] }
  0x3a   :  { %1266 = vmatpush.bf16.msrb.mxu1 %v2100_v61  ;;  %v2127_v61 = vld [vmem:[#allocation5 + $0x240] sm:$0xff]  ;;  %v2165_v13 = vld [vmem:[#allocation5 + $0x370] sm:$0xff] }
  0x3b   :  { %1279 = vmatpush.bf16.msrb.mxu2 %v2108_v62  ;;  %v2135_v62 = vld [vmem:[#allocation5 + $0x280] sm:$0xff]  ;;  %v2173_v14 = vld [vmem:[#allocation5 + $0x3b0] sm:$0xff] }
  0x3c   :  { %1292 = vmatpush.bf16.msrb.mxu3 %v2116_v63  ;;  %v2143_v63 = vld [vmem:[#allocation5 + $0x2c0] sm:$0xff]  ;;  %v2181_v15 = vld [vmem:[#allocation5 + $0x3f0] sm:$0xff] }
  0x3d   :  { %1254 = vmatpush.bf16.msrb.mxu0 %v2091_v0  ;;  %v2158_v0 = vld [vmem:[#allocation5 + $0x338] sm:$0xff] }
  0x3e   :  { %1267 = vmatpush.bf16.msrb.mxu1 %v2099_v1  ;;  %v2166_v1 = vld [vmem:[#allocation5 + $0x378] sm:$0xff] }
  0x3f   :  { %1280 = vmatpush.bf16.msrb.mxu2 %v2107_v2  ;;  %v131_v2 = vld.sshfl [vmem:[#allocation1] sm:$0xff pattern:$0x73625140] }
  0x40   :  { %1293 = vmatpush.bf16.msrb.mxu3 %v2115_v3  ;;  %v133_v3 = vld.sshfl [vmem:[#allocation1 + $0x10] sm:$0xff pattern:$0x73625140]  ;;  %v163_v8 = vpack.c.bf16 %v131_v2, %v131_v2 }
  0x41   :  { %1255 = vmatpush.bf16.msrb.mxu0 %v2090_v4  ;;  %v132_v4 = vld.sshfl [vmem:[#allocation1 + $0x8] sm:$0xff pattern:$0x73625140]  ;;  %v165_v9 = vpack.c.bf16 %v133_v3, %v133_v3 }
  0x42   :  { %1268 = vmatpush.bf16.msrb.mxu1 %v2098_v5  ;;  %v134_v5 = vld.sshfl [vmem:[#allocation1 + $0x18] sm:$0xff pattern:$0x73625140]  ;;  %v164_v10 = vpack.c.bf16 %v132_v4, %v132_v4 }
  0x43   :  { %1281 = vmatpush.bf16.msrb.mxu2 %v2106_v6  ;;  %v2174_v6 = vld [vmem:[#allocation5 + $0x3b8] sm:$0xff]  ;;  %v166_v11 = vpack.c.bf16 %v134_v5, %v134_v5  ;;  %v2189_v4 = vld [vmem:[#allocation7 + $0x30] sm:$0xff]  ;;  %v2188_v5 = vld [vmem:[#allocation7 + $0x28] sm:$0xff] }
  0x44   :  { %1294 = vmatpush.bf16.msrb.mxu3 %v2114_v7  ;;  %v2182_v7 = vld [vmem:[#allocation5 + $0x3f8] sm:$0xff] }
  0x45   :  { %1256 = vmatpush.bf16.msrb.mxu0 %v2089_v16  ;;  %v2156_v16 = vld [vmem:[#allocation5 + $0x328] sm:$0xff] }
  0x46   :  { %1269 = vmatpush.bf16.msrb.mxu1 %v2097_v17  ;;  %v2164_v17 = vld [vmem:[#allocation5 + $0x368] sm:$0xff] }
  0x47   :  { %1282 = vmatpush.bf16.msrb.mxu2 %v2105_v18  ;;  %v2172_v18 = vld [vmem:[#allocation5 + $0x3a8] sm:$0xff] }
  0x48   :  { %1295 = vmatpush.bf16.msrb.mxu3 %v2113_v19  ;;  %v2180_v19 = vld [vmem:[#allocation5 + $0x3e8] sm:$0xff] }
  0x49   :  { %1257 = vmatpush.bf16.msrb.mxu0 %v2088_v20  ;;  %v2155_v20 = vld [vmem:[#allocation5 + $0x320] sm:$0xff] }
  0x4a   :  { %1270 = vmatpush.bf16.msrb.mxu1 %v2096_v21  ;;  %v2163_v21 = vld [vmem:[#allocation5 + $0x360] sm:$0xff] }
  0x4b   :  { %1283 = vmatpush.bf16.msrb.mxu2 %v2104_v22  ;;  %v2171_v22 = vld [vmem:[#allocation5 + $0x3a0] sm:$0xff] }
  0x4c   :  { %1296 = vmatpush.bf16.msrb.mxu3 %v2112_v23  ;;  %v2179_v23 = vld [vmem:[#allocation5 + $0x3e0] sm:$0xff] }
  0x4d   :  { %1258 = vmatpush.bf16.msrb.mxu0 %v2087_v24  ;;  %v2154_v24 = vld [vmem:[#allocation5 + $0x318] sm:$0xff] }
  0x4e   :  { %1271 = vmatpush.bf16.msrb.mxu1 %v2095_v25  ;;  %v2162_v25 = vld [vmem:[#allocation5 + $0x358] sm:$0xff] }
  0x4f   :  { %1284 = vmatpush.bf16.msrb.mxu2 %v2103_v26  ;;  %v2170_v26 = vld [vmem:[#allocation5 + $0x398] sm:$0xff] }
  0x50   :  { %1297 = vmatpush.bf16.msrb.mxu3 %v2111_v27  ;;  %1259 = vmatmul.bf16.vlgmr.msrb.gmra.mxu0 %v159_v33  ;;  %v2178_v27 = vld [vmem:[#allocation5 + $0x3d8] sm:$0xff]  ;;  %v2160_v33 = vld [vmem:[#allocation5 + $0x348] sm:$0xff] }
  0x51   :  { %1303 = vmatpush.bf16.msra.mxu0 %v2126_v28  ;;  %1272 = vmatmul.bf16.vlgmr.msrb.gmra.mxu1 %v160_v35  ;;  %v2153_v28 = vld [vmem:[#allocation5 + $0x310] sm:$0xff]  ;;  %v2176_v35 = vld [vmem:[#allocation5 + $0x3c8] sm:$0xff] }
  0x52   :  { %1316 = vmatpush.bf16.msra.mxu1 %v2134_v29  ;;  %1285 = vmatmul.bf16.vlgmr.msrb.gmra.mxu2 %v161_v32  ;;  %v2161_v29 = vld [vmem:[#allocation5 + $0x350] sm:$0xff]  ;;  %v2152_v32 = vld [vmem:[#allocation5 + $0x308] sm:$0xff] }
  0x53   :  { %1329 = vmatpush.bf16.msra.mxu2 %v2142_v30  ;;  %1298 = vmatmul.bf16.vlgmr.msrb.gmra.mxu3 %v162_v34  ;;  %v2169_v30 = vld [vmem:[#allocation5 + $0x390] sm:$0xff]  ;;  %v2168_v34 = vld [vmem:[#allocation5 + $0x388] sm:$0xff] }
  0x54   :  { %1342 = vmatpush.bf16.msra.mxu3 %v2150_v31  ;;  %v2177_v31 = vld [vmem:[#allocation5 + $0x3d0] sm:$0xff] }
  0x55   :  { %1304 = vmatpush.bf16.msra.mxu0 %v2125_v36  ;;  %v2151_v36 = vld [vmem:[#allocation5 + $0x300] sm:$0xff] }
  0x56   :  { %1317 = vmatpush.bf16.msra.mxu1 %v2133_v37  ;;  %v2159_v37 = vld [vmem:[#allocation5 + $0x340] sm:$0xff] }
  0x57   :  { %1330 = vmatpush.bf16.msra.mxu2 %v2141_v38  ;;  %v2167_v38 = vld [vmem:[#allocation5 + $0x380] sm:$0xff] }
  0x58   :  { %1343 = vmatpush.bf16.msra.mxu3 %v2149_v39  ;;  %v2175_v39 = vld [vmem:[#allocation5 + $0x3c0] sm:$0xff] }
  0x59   :  { %1305 = vmatpush.bf16.msra.mxu0 %v2124_v40  ;;  %v135_v40 = vld.sshfl [vmem:[#allocation1 + $0x20] sm:$0xff pattern:$0x73625140] }
  0x5a   :  { %1318 = vmatpush.bf16.msra.mxu1 %v2132_v41  ;;  %v136_v41 = vld.sshfl [vmem:[#allocation1 + $0x28] sm:$0xff pattern:$0x73625140] }
  0x5b   :  { %1331 = vmatpush.bf16.msra.mxu2 %v2140_v42  ;;  %v137_v42 = vld.sshfl [vmem:[#allocation1 + $0x30] sm:$0xff pattern:$0x73625140] }
  0x5c   :  { %1344 = vmatpush.bf16.msra.mxu3 %v2148_v43  ;;  %v138_v43 = vld.sshfl [vmem:[#allocation1 + $0x38] sm:$0xff pattern:$0x73625140] }
  0x5d   :  { %1306 = vmatpush.bf16.msra.mxu0 %v2123_v44  ;;  %v167_v44 = vpack.c.bf16 %v135_v40, %v135_v40 }
  0x5e   :  { %1319 = vmatpush.bf16.msra.mxu1 %v2131_v45  ;;  %v168_v45 = vpack.c.bf16 %v136_v41, %v136_v41 }
  0x5f   :  { %1332 = vmatpush.bf16.msra.mxu2 %v2139_v46  ;;  %v169_v46 = vpack.c.bf16 %v137_v42, %v137_v42 }
  0x60   :  { %1345 = vmatpush.bf16.msra.mxu3 %v2147_v47  ;;  %v170_v47 = vpack.c.bf16 %v138_v43, %v138_v43  ;;  %v2201_v43 = vld [vmem:[%s2368_s4] ss:$0 sm:$0xff] }
  0x61   :  { %1307 = vmatpush.bf16.msra.mxu0 %v2122_v48  ;;  %v2200_v48 = vld [vmem:[%s2366_s2] ss:$0 sm:$0xff] }
  0x62   :  { %1320 = vmatpush.bf16.msra.mxu1 %v2130_v49 }
  0x63   :  { %1333 = vmatpush.bf16.msra.mxu2 %v2138_v50 }
  0x64   :  { %1346 = vmatpush.bf16.msra.mxu3 %v2146_v51 }
  0x65   :  { %1308 = vmatpush.bf16.msra.mxu0 %v2121_v52 }
  0x66   :  { %1321 = vmatpush.bf16.msra.mxu1 %v2129_v53 }
  0x67   :  { %1334 = vmatpush.bf16.msra.mxu2 %v2137_v54 }
  0x68   :  { %1347 = vmatpush.bf16.msra.mxu3 %v2145_v55 }
  0x69   :  { %1309 = vmatpush.bf16.msra.mxu0 %v2120_v56 }
  0x6a   :  { %1322 = vmatpush.bf16.msra.mxu1 %v2128_v57 }
  0x6b   :  { %1335 = vmatpush.bf16.msra.mxu2 %v2136_v58 }
  0x6c   :  { %1348 = vmatpush.bf16.msra.mxu3 %v2144_v59 }
  0x6d   :  { %1310 = vmatpush.bf16.msra.mxu0 %v2119_v60 }
  0x6e   :  { %1323 = vmatpush.bf16.msra.mxu1 %v2127_v61 }
  0x6f   :  { %1336 = vmatpush.bf16.msra.mxu2 %v2135_v62 }
  0x70   :  { %1349 = vmatpush.bf16.msra.mxu3 %v2143_v63  ;;  %1311 = vmatmul.bf16.vlgmr.msra.gmra.mxu0 %v163_v8  ;;  %v2187_v8 = vld [vmem:[#allocation7 + $0x20] sm:$0xff] }
  0x71   :  { %1355 = vmatpush.bf16.msrb.mxu0 %v2158_v0  ;;  %1324 = vmatmul.bf16.vlgmr.msra.gmra.mxu1 %v164_v10 }
  0x72   :  { %1368 = vmatpush.bf16.msrb.mxu1 %v2166_v1  ;;  %1337 = vmatmul.bf16.vlgmr.msra.gmra.mxu2 %v165_v9  ;;  %v2190_v1 = vld [vmem:[#allocation7 + $0x38] sm:$0xff] }
  0x73   :  { %1381 = vmatpush.bf16.msrb.mxu2 %v2174_v6  ;;  %1350 = vmatmul.bf16.vlgmr.msra.gmra.mxu3 %v166_v11  ;;  %v2186_v9 = vld [vmem:[#allocation7 + $0x18] sm:$0xff]  ;;  %v2185_v11 = vld [vmem:[#allocation7 + $0x10] sm:$0xff] }
  0x74   :  { %1394 = vmatpush.bf16.msrb.mxu3 %v2182_v7 }
  0x75   :  { %1356 = vmatpush.bf16.msrb.mxu0 %v2157_v12 }
  0x76   :  { %1369 = vmatpush.bf16.msrb.mxu1 %v2165_v13  ;;  %v2184_v13 = vld [vmem:[#allocation7 + $0x8] sm:$0xff] }
  0x77   :  { %1382 = vmatpush.bf16.msrb.mxu2 %v2173_v14 }
  0x78   :  { %1395 = vmatpush.bf16.msrb.mxu3 %v2181_v15 }
  0x79   :  { %1357 = vmatpush.bf16.msrb.mxu0 %v2156_v16 }
  0x7a   :  { %1370 = vmatpush.bf16.msrb.mxu1 %v2164_v17 }
  0x7b   :  { %1383 = vmatpush.bf16.msrb.mxu2 %v2172_v18  ;;  %v2183_v18 = vld [vmem:[#allocation7] sm:$0xff] }
  0x7c   :  { %1396 = vmatpush.bf16.msrb.mxu3 %v2180_v19 }
  0x7d   :  { %1358 = vmatpush.bf16.msrb.mxu0 %v2155_v20 }
  0x7e   :  { %1371 = vmatpush.bf16.msrb.mxu1 %v2163_v21 }
  0x7f   :  { %1384 = vmatpush.bf16.msrb.mxu2 %v2171_v22 }
  0x80   :  { %1397 = vmatpush.bf16.msrb.mxu3 %v2179_v23 }
  0x81   :  { %1359 = vmatpush.bf16.msrb.mxu0 %v2154_v24 }
  0x82   :  { %1372 = vmatpush.bf16.msrb.mxu1 %v2162_v25 }
  0x83   :  { %1385 = vmatpush.bf16.msrb.mxu2 %v2170_v26 }
  0x84   :  { %1398 = vmatpush.bf16.msrb.mxu3 %v2178_v27 }
  0x85   :  { %1360 = vmatpush.bf16.msrb.mxu0 %v2153_v28 }
  0x86   :  { %1373 = vmatpush.bf16.msrb.mxu1 %v2161_v29 }
  0x87   :  { %1386 = vmatpush.bf16.msrb.mxu2 %v2169_v30 }
  0x88   :  { %1399 = vmatpush.bf16.msrb.mxu3 %v2177_v31 }
  0x89   :  { %1361 = vmatpush.bf16.msrb.mxu0 %v2152_v32 }
  0x8a   :  { %1374 = vmatpush.bf16.msrb.mxu1 %v2160_v33 }
  0x8b   :  { %1387 = vmatpush.bf16.msrb.mxu2 %v2168_v34 }
  0x8c   :  { %1400 = vmatpush.bf16.msrb.mxu3 %v2176_v35 }
  0x8d   :  { %1362 = vmatpush.bf16.msrb.mxu0 %v2151_v36 }
  0x8e   :  { %1375 = vmatpush.bf16.msrb.mxu1 %v2159_v37 }
  0x8f   :  { %1388 = vmatpush.bf16.msrb.mxu2 %v2167_v38 }
  0x90   :  { %1401 = vmatpush.bf16.msrb.mxu3 %v2175_v39  ;;  %1363 = vmatmul.bf16.vlgmr.msrb.gmra.mxu0 %v167_v44 }
  0x91   :  { %1376 = vmatmul.bf16.vlgmr.msrb.gmra.mxu1 %v168_v45  ;;  %1477 = vmatpush.bf16.msra.mxu0 %v2190_v1 }
  0x92   :  { %1389 = vmatmul.bf16.vlgmr.msrb.gmra.mxu2 %v169_v46 }
  0x93   :  { %1402 = vmatmul.bf16.vlgmr.msrb.gmra.mxu3 %v170_v47 }
  0x95   :  { %1478 = vmatpush.bf16.msra.mxu0 %v2189_v4 }
  0x99   :  { %1479 = vmatpush.bf16.msra.mxu0 %v2188_v5 }
  0x9d   :  { %1480 = vmatpush.bf16.msra.mxu0 %v2187_v8 }
  0xa1   :  { %1481 = vmatpush.bf16.msra.mxu0 %v2186_v9 }
  0xa5   :  { %1482 = vmatpush.bf16.msra.mxu0 %v2185_v11 }
  0xa9   :  { %1483 = vmatpush.bf16.msra.mxu0 %v2184_v13 }
  0xad   :  { %v1208_v49 = vpop.f32.mrf.mxu0  ;;  %1484 = vmatpush.bf16.msra.mxu0 %v2183_v18 }
  0xae   :  { %v1209_v50 = vadd.f32 %v2200_v48, %v1208_v49  ;;  %v1221_v51 = vpop.f32.mrf.mxu1 }
  0xb0   :  { %v1222_v52 = vadd.f32 %v1221_v51, %v1209_v50 }
  0xb5   :  { %v1234_v53 = vpop.f32.mrf.mxu2  ;;  %v1210_v56 = vpop.f32.mrf.mxu0 }
  0xb6   :  { %v1235_v54 = vadd.f32 %v1234_v53, %v1222_v52  ;;  %v1247_v55 = vpop.f32.mrf.mxu3  ;;  %v1223_v58 = vpop.f32.mrf.mxu1 }
  0xb8   :  { %v1248_v57 = vadd.f32 %v1247_v55, %v1235_v54 }
  0xbd   :  { %v1236_v59 = vpop.f32.mrf.mxu2 }
  0xbe   :  { %v1249_v60 = vpop.f32.mrf.mxu3 }
  0xcd   :  { %v1260_v61 = vpop.f32.mrf.mxu0 }
  0xce   :  { %v1273_v62 = vpop.f32.mrf.mxu1  ;;  %v1261_v14 = vadd.f32 %v1260_v61, %v1248_v57 }
  0xd0   :  { %v1274_v19 = vadd.f32 %v1273_v62, %v1261_v14 }
  0xd5   :  { %v1286_v63 = vpop.f32.mrf.mxu2  ;;  %v1262_v2 = vpop.f32.mrf.mxu0 }
  0xd6   :  { %v1299_v0 = vpop.f32.mrf.mxu3  ;;  %v1275_v3 = vpop.f32.mrf.mxu1  ;;  %v1287_v21 = vadd.f32 %v1286_v63, %v1274_v19 }
  0xd8   :  { %v1300_v24 = vadd.f32 %v1299_v0, %v1287_v21 }
  0xdd   :  { %v1288_v6 = vpop.f32.mrf.mxu2 }
  0xde   :  { %v1301_v7 = vpop.f32.mrf.mxu3 }
  0xed   :  { %v1312_v10 = vpop.f32.mrf.mxu0 }
  0xee   :  { %v1325_v12 = vpop.f32.mrf.mxu1  ;;  %v1313_v25 = vadd.f32 %v1312_v10, %v1300_v24 }
  0xf0   :  { %v1326_v26 = vadd.f32 %v1325_v12, %v1313_v25 }
  0xf5   :  { %v1338_v15 = vpop.f32.mrf.mxu2  ;;  %v1314_v17 = vpop.f32.mrf.mxu0 }
  0xf6   :  { %v1351_v16 = vpop.f32.mrf.mxu3  ;;  %v1327_v20 = vpop.f32.mrf.mxu1  ;;  %v1339_v27 = vadd.f32 %v1338_v15, %v1326_v26 }
  0xf8   :  { %v1352_v28 = vadd.f32 %v1351_v16, %v1339_v27 }
  0xfd   :  { %v1340_v22 = vpop.f32.mrf.mxu2 }
  0xfe   :  { %v1353_v23 = vpop.f32.mrf.mxu3 }
 0x10d   :  { %v1364_v29 = vpop.f32.mrf.mxu0 }
 0x10e   :  { %v1377_v30 = vpop.f32.mrf.mxu1  ;;  %v1365_v31 = vadd.f32 %v1364_v29, %v1352_v28 }
 0x110   :  { %v1378_v32 = vadd.f32 %v1377_v30, %v1365_v31 }
 0x115   :  { %v1390_v33 = vpop.f32.mrf.mxu2  ;;  %v1366_v36 = vpop.f32.mrf.mxu0 }
 0x116   :  { %v1403_v34 = vpop.f32.mrf.mxu3  ;;  %v1391_v35 = vadd.f32 %v1390_v33, %v1378_v32  ;;  %v1379_v37 = vpop.f32.mrf.mxu1 }
 0x118   :  { %v1404_v38 = vadd.f32 %v1403_v34, %v1391_v35 }
 0x11a   :  { %v1407_v39 = vmax.f32 %v1404_v38, 0.0 }
 0x11c   :  { %v1408_v40 = vpack.c.bf16 %v1407_v39, %v1407_v39 }
 0x11d   :  { %v1392_v41 = vpop.f32.mrf.mxu2 }
 0x11e   :  { %v1405_v42 = vpop.f32.mrf.mxu3  ;;  %1485 = vmatmul.bf16.vlgmr.msra.gmra.mxu0 %v1408_v40 }
 0x19b   :  { %v1486_v44 = vpop.f32.mrf.mxu0 }
 0x19c   :  { %v1487_v45 = vadd.f32 %v2201_v43, %v1486_v44 }
 0x19e   :  { %1490 = vst [vmem:[#allocation8] sm:$0xff] %v1487_v45 }
 0x1a3   :  { %v1488_v46 = vpop.f32.mrf.mxu0 }
 0x1a4   :  { %1494 = vsyncadd [#allocation4], 96  ;;  %s1497_s14 = sshll.u32 %s2369_s5, 4  ;;  %s2311_s15 = smov [#allocation8]   ;;  %s1498_s14 = int_to_ptr.hbm [resolvable:$true] %s1497_s14 }
 0x1a5   :  { %s1495_s16 = sshll.u32 %s2311_s15, 4  ;;  %s2312_s17 = smov 2   ;;  %s1496_s16 = int_to_ptr.vmem [resolvable:$true] %s1495_s16 }
 0x1a6   :  { %1503 = dma.vmem_to_hbm [thread:$0]  %s1496_s16, 32, %s1498_s14, [#allocation4], %s2309_s6, %s2309_s6, %s2312_s17  }
 0x1a7   :  { %2302 = dma.done.wait [#allocation4], 128  }
 0x1a8   :  { %2303 = vsyncadd [#allocation4], 4294967168 }
 0x1a9   :  { %1508 = vsyncpa [#allocation3], 1 }
 0x1aa   :  { %1509 = vsyncpa [#allocation6], 1 }
 0x1ab   :  { %1510 = vsyncpa [#allocation4], 1 }

</bundles_post_ra>
